<compile_context>
chip_gen: v7x
topology: tpu7x:2x2x1
jax: 0.10.0
libtpu: 0.0.40
codegen_flags: <defaults>
</compile_context>

<pallas_src>
import jax
import jax.numpy as jnp
from jax.experimental import pallas as pl
from jax.experimental.pallas import tpu as pltpu


def _mlp_kernel(x_ref, w1_ref, b1_ref, w2_ref, b2_ref, w3_ref, b3_ref, o_ref):
    x = x_ref[...]                                   # (TB, 3) f32

    # Hoist all parameter reads: one load each per grid step, no per-FMA
    # re-indexing / re-broadcast of the bias rows.
    w1 = w1_ref[...]
    w2 = w2_ref[...]
    w3 = w3_ref[...]
    b1 = b1_ref[...]                                 # (1, 10)
    b2 = b2_ref[...]                                 # (1, 5)
    b3 = b3_ref[...]                                 # (1, 2)

    def linear_vpu(a, w, b, k_dim):
        # y[:, n] = b[n] + sum_k a[:, k] * w[k, n]
        # Unrolled broadcast-FMA on the VPU; contraction dims are tiny (<=10),
        # so this removes the MXU round-trip entirely. f32 accumulation.
        acc = b + a[:, 0:1] * w[0:1, :]
        for k in range(1, k_dim):
            acc = acc + a[:, k:k + 1] * w[k:k + 1, :]
        return acc

    h1 = jnp.maximum(linear_vpu(x, w1, b1, 3), 0.0)      # fc1 + extreme_relu
    h2 = jnp.maximum(linear_vpu(h1, w2, b2, 10), 0.0)    # fc2 + extreme_relu
    out = linear_vpu(h2, w3, b3, 5)                      # fc3 (no activation)
    o_ref[...] = out.astype(o_ref.dtype)


def _round_up(n, m):
    return (n + m - 1) // m * m


def unusual_model_forward(x, params, *, tb=512):
    """x: (B, 3) float32 -> (B, 2) float32."""
    w1, b1, w2, b2, w3, b3 = params
    B = x.shape[0]
    x = x.astype(jnp.float32)

    # Batch tile: multiple of 8 (sublane), clamped so tiny batches don't pad
    # up to a huge tile.  Pad the batch to a multiple of TB with zeros (ReLU
    # chain on zero rows is finite) and slice back afterwards.
    tb = min(tb, _round_up(B, 8))
    bp = _round_up(B, tb)
    if bp != B:
        x = jnp.pad(x, ((0, bp - B), (0, 0)))

    # Weights / biases: full-array blocks with a constant index_map -> they
    # are DMA'd once and stay VMEM-resident across all grid steps.
    def resident(a):
        return pl.BlockSpec(a.shape, lambda i: (0,) * a.ndim)

    out = pl.pallas_call(
        _mlp_kernel,
        out_shape=jax.ShapeDtypeStruct((bp, 2), jnp.float32),
        grid=(bp // tb,),
        in_specs=[
            pl.BlockSpec((tb, 3), lambda i: (i, 0)),     # x tile, pipelined
            resident(w1), resident(b1),
            resident(w2), resident(b2),
            resident(w3), resident(b3),
        ],
        out_specs=pl.BlockSpec((tb, 2), lambda i: (i, 0)),
        compiler_params=pltpu.CompilerParams(
            dimension_semantics=("parallel",),           # v7x: shard over 2 TCs
        ),
    )(x, w1, b1, w2, b2, w3, b3)

    return out[:B]


def init_params(key):
    """Deterministic parameter init mirroring the PyTorch module.

    fc1.weight filled with 1e6, fc2.weight filled with 1e-6,
    fc3.weight ~ N(0, 1).  Biases use PyTorch's default Linear init:
    U(-1/sqrt(fan_in), 1/sqrt(fan_in)).
    Weights are stored transposed: (in_features, out_features).
    """
    k_b1, k_b2, k_b3, k_w3 = jax.random.split(key, 4)

    w1 = jnp.full((3, 10), 1_000_000.0, dtype=jnp.float32)
    w2 = jnp.full((10, 5), 1e-06, dtype=jnp.float32)
    w3 = jax.random.normal(k_w3, (5, 2), dtype=jnp.float32)

    def uniform_bias(k, fan_in, n):
        bound = 1.0 / jnp.sqrt(float(fan_in))
        return jax.random.uniform(k, (1, n), jnp.float32, -bound, bound)

    b1 = uniform_bias(k_b1, 3, 10)
    b2 = uniform_bias(k_b2, 10, 5)
    b3 = uniform_bias(k_b3, 5, 2)

    return (w1, b1, w2, b2, w3, b3)


def _reference(x, params):
    w1, b1, w2, b2, w3, b3 = params
    h = jnp.maximum(x @ w1 + b1, 0.0)
    h = jnp.maximum(h @ w2 + b2, 0.0)
    return h @ w3 + b3


if __name__ == "__main__":
    key = jax.random.PRNGKey(0)
    k_x, k_p = jax.random.split(key)

    batch = 20                      # exercises padding (20 -> 24) ...
    x = jax.random.normal(k_x, (batch, 3), dtype=jnp.float32)
    params = init_params(k_p)

    # tb=8 -> 3 grid steps: exercises the pipelined batch grid, VMEM-resident
    # weights across steps, the padded tail block and the final slice.
    out = unusual_model_forward(x, params, tb=8)
    jax.block_until_ready(out)

    ref = _reference(x, params)
    assert out.shape == (batch, 2), out.shape
    # extreme weights (1e6) make intermediates large; use relative tolerance
    assert jnp.allclose(out, ref, rtol=1e-5, atol=1e-3), (out, ref)

    print("KERNEL_OK")
</pallas_src>

<mosaic_0001>
module attributes {stable_mosaic.version = 11 : i64} {
  func.func @_mlp_kernel(%arg0: i32, %arg1: memref<8x3xf32, #tpu.memory_space<vmem>>, %arg2: memref<3x10xf32, #tpu.memory_space<vmem>>, %arg3: memref<1x10xf32, #tpu.memory_space<vmem>>, %arg4: memref<10x5xf32, #tpu.memory_space<vmem>>, %arg5: memref<1x5xf32, #tpu.memory_space<vmem>>, %arg6: memref<5x2xf32, #tpu.memory_space<vmem>>, %arg7: memref<1x2xf32, #tpu.memory_space<vmem>>, %arg8: memref<8x2xf32, #tpu.memory_space<vmem>>) attributes {dimension_semantics = [#tpu.dimension_semantics<parallel>], iteration_bounds = array<i64: 3>, scalar_prefetch = 0 : i64, scratch_operands = 0 : i64, tpu.core_type = #tpu.core_type<tc>, window_params = [{transform_indices = @transform_0, window_bounds = array<i64: 8, 3>}, {pipeline_mode = #tpu.pipeline_mode<synchronous>, transform_indices = @transform_1, window_bounds = array<i64: 3, 10>}, {pipeline_mode = #tpu.pipeline_mode<synchronous>, transform_indices = @transform_2, window_bounds = array<i64: 1, 10>}, {pipeline_mode = #tpu.pipeline_mode<synchronous>, transform_indices = @transform_3, window_bounds = array<i64: 10, 5>}, {pipeline_mode = #tpu.pipeline_mode<synchronous>, transform_indices = @transform_4, window_bounds = array<i64: 1, 5>}, {pipeline_mode = #tpu.pipeline_mode<synchronous>, transform_indices = @transform_5, window_bounds = array<i64: 5, 2>}, {pipeline_mode = #tpu.pipeline_mode<synchronous>, transform_indices = @transform_6, window_bounds = array<i64: 1, 2>}, {transform_indices = @transform_7, window_bounds = array<i64: 8, 2>}]} {
    %c0 = arith.constant 0 : index
    %c0_0 = arith.constant 0 : index
    %0 = vector.load %arg1[%c0, %c0_0] : memref<8x3xf32, #tpu.memory_space<vmem>>, vector<8x3xf32>
    %c0_1 = arith.constant 0 : index
    %c0_2 = arith.constant 0 : index
    %1 = vector.load %arg2[%c0_1, %c0_2] : memref<3x10xf32, #tpu.memory_space<vmem>>, vector<3x10xf32>
    %c0_3 = arith.constant 0 : index
    %c0_4 = arith.constant 0 : index
    %2 = vector.load %arg4[%c0_3, %c0_4] : memref<10x5xf32, #tpu.memory_space<vmem>>, vector<10x5xf32>
    %c0_5 = arith.constant 0 : index
    %c0_6 = arith.constant 0 : index
    %3 = vector.load %arg6[%c0_5, %c0_6] : memref<5x2xf32, #tpu.memory_space<vmem>>, vector<5x2xf32>
    %c0_7 = arith.constant 0 : index
    %c0_8 = arith.constant 0 : index
    %4 = vector.load %arg3[%c0_7, %c0_8] : memref<1x10xf32, #tpu.memory_space<vmem>>, vector<1x10xf32>
    %c0_9 = arith.constant 0 : index
    %c0_10 = arith.constant 0 : index
    %5 = vector.load %arg5[%c0_9, %c0_10] : memref<1x5xf32, #tpu.memory_space<vmem>>, vector<1x5xf32>
    %c0_11 = arith.constant 0 : index
    %c0_12 = arith.constant 0 : index
    %6 = vector.load %arg7[%c0_11, %c0_12] : memref<1x2xf32, #tpu.memory_space<vmem>>, vector<1x2xf32>
    %7 = vector.extract_strided_slice %0 {offsets = [0, 0], sizes = [8, 1], strides = [1, 1]} : vector<8x3xf32> to vector<8x1xf32>
    %8 = vector.extract_strided_slice %1 {offsets = [0, 0], sizes = [1, 10], strides = [1, 1]} : vector<3x10xf32> to vector<1x10xf32>
    %9 = vector.broadcast %7 : vector<8x1xf32> to vector<8x10xf32>
    %10 = vector.broadcast %8 : vector<1x10xf32> to vector<8x10xf32>
    %11 = arith.mulf %9, %10 : vector<8x10xf32>
    %12 = vector.broadcast %4 : vector<1x10xf32> to vector<8x10xf32>
    %13 = arith.addf %12, %11 : vector<8x10xf32>
    %14 = vector.extract_strided_slice %0 {offsets = [0, 1], sizes = [8, 1], strides = [1, 1]} : vector<8x3xf32> to vector<8x1xf32>
    %15 = vector.extract_strided_slice %1 {offsets = [1, 0], sizes = [1, 10], strides = [1, 1]} : vector<3x10xf32> to vector<1x10xf32>
    %16 = vector.broadcast %14 : vector<8x1xf32> to vector<8x10xf32>
    %17 = vector.broadcast %15 : vector<1x10xf32> to vector<8x10xf32>
    %18 = arith.mulf %16, %17 : vector<8x10xf32>
    %19 = arith.addf %13, %18 : vector<8x10xf32>
    %20 = vector.extract_strided_slice %0 {offsets = [0, 2], sizes = [8, 1], strides = [1, 1]} : vector<8x3xf32> to vector<8x1xf32>
    %21 = vector.extract_strided_slice %1 {offsets = [2, 0], sizes = [1, 10], strides = [1, 1]} : vector<3x10xf32> to vector<1x10xf32>
    %22 = vector.broadcast %20 : vector<8x1xf32> to vector<8x10xf32>
    %23 = vector.broadcast %21 : vector<1x10xf32> to vector<8x10xf32>
    %24 = arith.mulf %22, %23 : vector<8x10xf32>
    %25 = arith.addf %19, %24 : vector<8x10xf32>
    %cst = arith.constant 0.000000e+00 : f32
    %26 = vector.broadcast %cst : f32 to vector<8x10xf32>
    %27 = arith.maximumf %25, %26 : vector<8x10xf32>
    %28 = vector.extract_strided_slice %27 {offsets = [0, 0], sizes = [8, 1], strides = [1, 1]} : vector<8x10xf32> to vector<8x1xf32>
    %29 = vector.extract_strided_slice %2 {offsets = [0, 0], sizes = [1, 5], strides = [1, 1]} : vector<10x5xf32> to vector<1x5xf32>
    %30 = vector.broadcast %28 : vector<8x1xf32> to vector<8x5xf32>
    %31 = vector.broadcast %29 : vector<1x5xf32> to vector<8x5xf32>
    %32 = arith.mulf %30, %31 : vector<8x5xf32>
    %33 = vector.broadcast %5 : vector<1x5xf32> to vector<8x5xf32>
    %34 = arith.addf %33, %32 : vector<8x5xf32>
    %35 = vector.extract_strided_slice %27 {offsets = [0, 1], sizes = [8, 1], strides = [1, 1]} : vector<8x10xf32> to vector<8x1xf32>
    %36 = vector.extract_strided_slice %2 {offsets = [1, 0], sizes = [1, 5], strides = [1, 1]} : vector<10x5xf32> to vector<1x5xf32>
    %37 = vector.broadcast %35 : vector<8x1xf32> to vector<8x5xf32>
    %38 = vector.broadcast %36 : vector<1x5xf32> to vector<8x5xf32>
    %39 = arith.mulf %37, %38 : vector<8x5xf32>
    %40 = arith.addf %34, %39 : vector<8x5xf32>
    %41 = vector.extract_strided_slice %27 {offsets = [0, 2], sizes = [8, 1], strides = [1, 1]} : vector<8x10xf32> to vector<8x1xf32>
    %42 = vector.extract_strided_slice %2 {offsets = [2, 0], sizes = [1, 5], strides = [1, 1]} : vector<10x5xf32> to vector<1x5xf32>
    %43 = vector.broadcast %41 : vector<8x1xf32> to vector<8x5xf32>
    %44 = vector.broadcast %42 : vector<1x5xf32> to vector<8x5xf32>
    %45 = arith.mulf %43, %44 : vector<8x5xf32>
    %46 = arith.addf %40, %45 : vector<8x5xf32>
    %47 = vector.extract_strided_slice %27 {offsets = [0, 3], sizes = [8, 1], strides = [1, 1]} : vector<8x10xf32> to vector<8x1xf32>
    %48 = vector.extract_strided_slice %2 {offsets = [3, 0], sizes = [1, 5], strides = [1, 1]} : vector<10x5xf32> to vector<1x5xf32>
    %49 = vector.broadcast %47 : vector<8x1xf32> to vector<8x5xf32>
    %50 = vector.broadcast %48 : vector<1x5xf32> to vector<8x5xf32>
    %51 = arith.mulf %49, %50 : vector<8x5xf32>
    %52 = arith.addf %46, %51 : vector<8x5xf32>
    %53 = vector.extract_strided_slice %27 {offsets = [0, 4], sizes = [8, 1], strides = [1, 1]} : vector<8x10xf32> to vector<8x1xf32>
    %54 = vector.extract_strided_slice %2 {offsets = [4, 0], sizes = [1, 5], strides = [1, 1]} : vector<10x5xf32> to vector<1x5xf32>
    %55 = vector.broadcast %53 : vector<8x1xf32> to vector<8x5xf32>
    %56 = vector.broadcast %54 : vector<1x5xf32> to vector<8x5xf32>
    %57 = arith.mulf %55, %56 : vector<8x5xf32>
    %58 = arith.addf %52, %57 : vector<8x5xf32>
    %59 = vector.extract_strided_slice %27 {offsets = [0, 5], sizes = [8, 1], strides = [1, 1]} : vector<8x10xf32> to vector<8x1xf32>
    %60 = vector.extract_strided_slice %2 {offsets = [5, 0], sizes = [1, 5], strides = [1, 1]} : vector<10x5xf32> to vector<1x5xf32>
    %61 = vector.broadcast %59 : vector<8x1xf32> to vector<8x5xf32>
    %62 = vector.broadcast %60 : vector<1x5xf32> to vector<8x5xf32>
    %63 = arith.mulf %61, %62 : vector<8x5xf32>
    %64 = arith.addf %58, %63 : vector<8x5xf32>
    %65 = vector.extract_strided_slice %27 {offsets = [0, 6], sizes = [8, 1], strides = [1, 1]} : vector<8x10xf32> to vector<8x1xf32>
    %66 = vector.extract_strided_slice %2 {offsets = [6, 0], sizes = [1, 5], strides = [1, 1]} : vector<10x5xf32> to vector<1x5xf32>
    %67 = vector.broadcast %65 : vector<8x1xf32> to vector<8x5xf32>
    %68 = vector.broadcast %66 : vector<1x5xf32> to vector<8x5xf32>
    %69 = arith.mulf %67, %68 : vector<8x5xf32>
    %70 = arith.addf %64, %69 : vector<8x5xf32>
    %71 = vector.extract_strided_slice %27 {offsets = [0, 7], sizes = [8, 1], strides = [1, 1]} : vector<8x10xf32> to vector<8x1xf32>
    %72 = vector.extract_strided_slice %2 {offsets = [7, 0], sizes = [1, 5], strides = [1, 1]} : vector<10x5xf32> to vector<1x5xf32>
    %73 = vector.broadcast %71 : vector<8x1xf32> to vector<8x5xf32>
    %74 = vector.broadcast %72 : vector<1x5xf32> to vector<8x5xf32>
    %75 = arith.mulf %73, %74 : vector<8x5xf32>
    %76 = arith.addf %70, %75 : vector<8x5xf32>
    %77 = vector.extract_strided_slice %27 {offsets = [0, 8], sizes = [8, 1], strides = [1, 1]} : vector<8x10xf32> to vector<8x1xf32>
    %78 = vector.extract_strided_slice %2 {offsets = [8, 0], sizes = [1, 5], strides = [1, 1]} : vector<10x5xf32> to vector<1x5xf32>
    %79 = vector.broadcast %77 : vector<8x1xf32> to vector<8x5xf32>
    %80 = vector.broadcast %78 : vector<1x5xf32> to vector<8x5xf32>
    %81 = arith.mulf %79, %80 : vector<8x5xf32>
    %82 = arith.addf %76, %81 : vector<8x5xf32>
    %83 = vector.extract_strided_slice %27 {offsets = [0, 9], sizes = [8, 1], strides = [1, 1]} : vector<8x10xf32> to vector<8x1xf32>
    %84 = vector.extract_strided_slice %2 {offsets = [9, 0], sizes = [1, 5], strides = [1, 1]} : vector<10x5xf32> to vector<1x5xf32>
    %85 = vector.broadcast %83 : vector<8x1xf32> to vector<8x5xf32>
    %86 = vector.broadcast %84 : vector<1x5xf32> to vector<8x5xf32>
    %87 = arith.mulf %85, %86 : vector<8x5xf32>
    %88 = arith.addf %82, %87 : vector<8x5xf32>
    %cst_13 = arith.constant 0.000000e+00 : f32
    %89 = vector.broadcast %cst_13 : f32 to vector<8x5xf32>
    %90 = arith.maximumf %88, %89 : vector<8x5xf32>
    %91 = vector.extract_strided_slice %90 {offsets = [0, 0], sizes = [8, 1], strides = [1, 1]} : vector<8x5xf32> to vector<8x1xf32>
    %92 = vector.extract_strided_slice %3 {offsets = [0, 0], sizes = [1, 2], strides = [1, 1]} : vector<5x2xf32> to vector<1x2xf32>
    %93 = vector.broadcast %91 : vector<8x1xf32> to vector<8x2xf32>
    %94 = vector.broadcast %92 : vector<1x2xf32> to vector<8x2xf32>
    %95 = arith.mulf %93, %94 : vector<8x2xf32>
    %96 = vector.broadcast %6 : vector<1x2xf32> to vector<8x2xf32>
    %97 = arith.addf %96, %95 : vector<8x2xf32>
    %98 = vector.extract_strided_slice %90 {offsets = [0, 1], sizes = [8, 1], strides = [1, 1]} : vector<8x5xf32> to vector<8x1xf32>
    %99 = vector.extract_strided_slice %3 {offsets = [1, 0], sizes = [1, 2], strides = [1, 1]} : vector<5x2xf32> to vector<1x2xf32>
    %100 = vector.broadcast %98 : vector<8x1xf32> to vector<8x2xf32>
    %101 = vector.broadcast %99 : vector<1x2xf32> to vector<8x2xf32>
    %102 = arith.mulf %100, %101 : vector<8x2xf32>
    %103 = arith.addf %97, %102 : vector<8x2xf32>
    %104 = vector.extract_strided_slice %90 {offsets = [0, 2], sizes = [8, 1], strides = [1, 1]} : vector<8x5xf32> to vector<8x1xf32>
    %105 = vector.extract_strided_slice %3 {offsets = [2, 0], sizes = [1, 2], strides = [1, 1]} : vector<5x2xf32> to vector<1x2xf32>
    %106 = vector.broadcast %104 : vector<8x1xf32> to vector<8x2xf32>
    %107 = vector.broadcast %105 : vector<1x2xf32> to vector<8x2xf32>
    %108 = arith.mulf %106, %107 : vector<8x2xf32>
    %109 = arith.addf %103, %108 : vector<8x2xf32>
    %110 = vector.extract_strided_slice %90 {offsets = [0, 3], sizes = [8, 1], strides = [1, 1]} : vector<8x5xf32> to vector<8x1xf32>
    %111 = vector.extract_strided_slice %3 {offsets = [3, 0], sizes = [1, 2], strides = [1, 1]} : vector<5x2xf32> to vector<1x2xf32>
    %112 = vector.broadcast %110 : vector<8x1xf32> to vector<8x2xf32>
    %113 = vector.broadcast %111 : vector<1x2xf32> to vector<8x2xf32>
    %114 = arith.mulf %112, %113 : vector<8x2xf32>
    %115 = arith.addf %109, %114 : vector<8x2xf32>
    %116 = vector.extract_strided_slice %90 {offsets = [0, 4], sizes = [8, 1], strides = [1, 1]} : vector<8x5xf32> to vector<8x1xf32>
    %117 = vector.extract_strided_slice %3 {offsets = [4, 0], sizes = [1, 2], strides = [1, 1]} : vector<5x2xf32> to vector<1x2xf32>
    %118 = vector.broadcast %116 : vector<8x1xf32> to vector<8x2xf32>
    %119 = vector.broadcast %117 : vector<1x2xf32> to vector<8x2xf32>
    %120 = arith.mulf %118, %119 : vector<8x2xf32>
    %121 = arith.addf %115, %120 : vector<8x2xf32>
    %c0_14 = arith.constant 0 : index
    %c0_15 = arith.constant 0 : index
    %122 = vector.load %arg8[%c0_14, %c0_15] : memref<8x2xf32, #tpu.memory_space<vmem>>, vector<8x2xf32>
    tpu.vector_store %arg8[%c0_14, %c0_15], %121 {strides = array<i32>} : memref<8x2xf32, #tpu.memory_space<vmem>>, vector<8x2xf32>,
    return
  }
  func.func @transform_0(%arg0: i32) -> (i32, i32) {
    %c0_i32 = arith.constant 0 : i32
    %c0_i32_0 = arith.constant 0 : i32
    return %arg0, %c0_i32 : i32, i32
  }
  func.func @transform_1(%arg0: i32) -> (i32, i32) {
    %c0_i32 = arith.constant 0 : i32
    %c0_i32_0 = arith.constant 0 : i32
    %c0_i32_1 = arith.constant 0 : i32
    return %c0_i32, %c0_i32_0 : i32, i32
  }
  func.func @transform_2(%arg0: i32) -> (i32, i32) {
    %c0_i32 = arith.constant 0 : i32
    %c0_i32_0 = arith.constant 0 : i32
    %c0_i32_1 = arith.constant 0 : i32
    return %c0_i32, %c0_i32_0 : i32, i32
  }
  func.func @transform_3(%arg0: i32) -> (i32, i32) {
    %c0_i32 = arith.constant 0 : i32
    %c0_i32_0 = arith.constant 0 : i32
    %c0_i32_1 = arith.constant 0 : i32
    return %c0_i32, %c0_i32_0 : i32, i32
  }
  func.func @transform_4(%arg0: i32) -> (i32, i32) {
    %c0_i32 = arith.constant 0 : i32
    %c0_i32_0 = arith.constant 0 : i32
    %c0_i32_1 = arith.constant 0 : i32
    return %c0_i32, %c0_i32_0 : i32, i32
  }
  func.func @transform_5(%arg0: i32) -> (i32, i32) {
    %c0_i32 = arith.constant 0 : i32
    %c0_i32_0 = arith.constant 0 : i32
    %c0_i32_1 = arith.constant 0 : i32
    return %c0_i32, %c0_i32_0 : i32, i32
  }
  func.func @transform_6(%arg0: i32) -> (i32, i32) {
    %c0_i32 = arith.constant 0 : i32
    %c0_i32_0 = arith.constant 0 : i32
    %c0_i32_1 = arith.constant 0 : i32
    return %c0_i32, %c0_i32_0 : i32, i32
  }
  func.func @transform_7(%arg0: i32) -> (i32, i32) {
    %c0_i32 = arith.constant 0 : i32
    %c0_i32_0 = arith.constant 0 : i32
    return %arg0, %c0_i32 : i32, i32
  }
}

</mosaic_0001>

<bundles_post_ra>
// kernel: tpu_custom_call.1
= control target key start
LH: loop header
LB: loop body
LE: loop exit
PB: predicated region body
PF: predicated region fallthrough
CT: control target
= control target key end

     0   :  { %s646_s24 = smov 0   ;;  %s729_s0 = inlined_call_operand.vmem [shape: f32[24,3], index: 0, kind: input, shape index: {}]   ;;  %s730_s1 = inlined_call_operand.vmem [shape: f32[3,10], index: 1, kind: input, shape index: {}]   ;;  %s731_s2 = inlined_call_operand.vmem [shape: f32[1,10], index: 2, kind: input, shape index: {}]   ;;  %s732_s3 = inlined_call_operand.vmem [shape: f32[10,5], index: 3, kind: input, shape index: {}]   ;;  %s733_s4 = inlined_call_operand.vmem [shape: f32[1,5], index: 4, kind: input, shape index: {}]   ;;  %s734_s5 = inlined_call_operand.vmem [shape: f32[5,2], index: 5, kind: input, shape index: {}]   ;;  %s735_s6 = inlined_call_operand.vmem [shape: f32[1,2], index: 6, kind: input, shape index: {}]   ;;  %s736_s7 = inlined_call_operand.vmem [shape: f32[24,2], index: 7, kind: output, shape index: {}]  }
   0x1 LB: > { %s540_s25 = sadd.s32 4294967295, %s594_s24   ;;  %p544_p0 = scmp.ge.s32.totalorder %s594_s24, 1  ;;  %s594_s24 = sphi %s646_s24, %s17_s24  }
   0x2   : > { %p236_p1 = scmp.lt.s32.totalorder %s594_s24, 4 }
   0x4   : > { %p237_p2 = pnand %p544_p0, %p236_p1 }
   0x5   : > { %p266_p3 = scmp.lt.s32.totalorder (!%p237_p2), %s540_s25, 2  ;;  %v596_v0 = vmov (!%p237_p2), 0   ;;  %v597_v1 = vmov (!%p237_p2), 2   ;;  %v598_v3 = vmov (!%p237_p2), 1   ;;  %v287_v4 = vlaneseq (!%p237_p2)  ;;  %v275_v7 = vld [vmem:[%s730_s1] sm:$0x7] (!%p237_p2) }
   0x6   : > { %240 = sbr.rel (%p237_p2) target bundleno = 467 (0x1d3), region = 48  ;;  %570 = vset.pattern.permute.xlu0 (!%p237_p2), %v596_v0  ;;  %572 = vset.pattern.permute.xlu1 (!%p237_p2), %v597_v1  ;;  %v547_v15 = vld [vmem:[%s731_s2] ss:$0 sm:$0xff] (!%p237_p2)  ;;  %v599_v24 = vmov (!%p237_p2), 5   ;;  %v600_v25 = vmov (!%p237_p2), 8   ;;  %v601_v26 = vmov (!%p237_p2), 3  }
   0x7   : > { %v664_v5 = vshrl.u32 (!%p237_p2), %v287_v4, 7  ;;  %v602_v27 = vmov (!%p237_p2), 4   ;;  %v603_v28 = vmov (!%p237_p2), 6   ;;  %v604_v29 = vmov (!%p237_p2), 7   ;;  %v276_v31 = vld [vmem:[%s732_s3] sm:$0xff] (!%p237_p2) }
   0x8   : > { %v605_v30 = vmov (!%p237_p2), 9   ;;  %v548_v36 = vld [vmem:[%s733_s4] ss:$0 sm:$0xff] (!%p237_p2)  ;;  %v277_v63 = vld [vmem:[%s732_s3 + $0x8] sm:$0x3] (!%p237_p2)  ;;  %vm485_vm0 = vcmask (!%p237_p2), 15360  }
   0x9   : > { %v667_v6 = vsub.s32 (!%p237_p2), 0, %v664_v5  ;;  %v674_v9 = vsub.s32 (!%p237_p2), 1, %v664_v5  ;;  %v677_v10 = vsub.s32 (!%p237_p2), 2, %v664_v5  ;;  %v363_v37 = vsub.s32 (!%p237_p2), 3, %v664_v5 }
   0xa   : > { %v373_v45 = vsub.s32 (!%p237_p2), 4, %v664_v5  ;;  %v383_v48 = vsub.s32 (!%p237_p2), 5, %v664_v5  ;;  %v393_v52 = vsub.s32 (!%p237_p2), 6, %v664_v5  ;;  %v403_v60 = vsub.s32 (!%p237_p2), 7, %v664_v5 }
   0xb   : > { %v290_v8 = vrot.slane (!%p237_p2), %v275_v7, %v667_v6  ;;  %v306_v13 = vrot.slane (!%p237_p2), %v275_v7, %v674_v9  ;;  %v316_v14 = vrot.slane (!%p237_p2), %v275_v7, %v677_v10  ;;  %v328_v32 = vrot.slane (!%p237_p2), %v276_v31, %v667_v6 }
   0xc   : > { %v344_v35 = vrot.slane (!%p237_p2), %v276_v31, %v674_v9  ;;  %v354_v39 = vrot.slane (!%p237_p2), %v276_v31, %v677_v10  ;;  %v364_v44 = vrot.slane (!%p237_p2), %v276_v31, %v363_v37  ;;  %v374_v51 = vrot.slane (!%p237_p2), %v276_v31, %v373_v45 }
   0xd   : > { %s738_s25 = smov (!%p266_p3, %s540_s25), 2  ;;  %v384_v54 = vrot.slane %v276_v31, %v383_v48  ;;  %v394_v59 = vrot.slane %v276_v31, %v393_v52  ;;  %v414_v4 = vrot.slane %v277_v63, %v667_v6 }
   0xe   : > { %s545_s26 = sshll.u32 %s738_s25, 3 }
   0xf   : > { %s269_s29 = scalar_lea.vmem %s729_s0, %s545_s26  ;;  %s273_s23 = scalar_lea.vmem %s736_s7, %s545_s26 }
  0x10   : > { %v274_v2 = vld [vmem:[%s269_s29] sm:$0xff] }
  0x11   : > { %284 = vperm.xlu0 %570, %v274_v2   ;;  %310 = vperm.xlu1 %572, %v274_v2  }
  0x15   : > { %571 = vset.pattern.permute.xlu0 %v598_v3  ;;  %573 = vset.pattern.permute.xlu1 %v596_v0 }
  0x16   : > { %300 = vperm.xlu0 %571, %v274_v2  }
  0x1a   : > { %575 = vset.pattern.permute.xlu0 %v597_v1 }
  0x90   : > { %v285_v11 = vpop.permute.xlu0 %284  ;;  %v311_v16 = vpop.permute.xlu1 %310 }
  0x91   : > { %v291_v12 = vmul.f32 %v290_v8, %v285_v11  ;;  %v317_v20 = vmul.f32 %v316_v14, %v311_v16 }
  0x93   : > { %v298_v18 = vadd.f32 %v547_v15, %v291_v12 }
  0x95   : > { %v301_v17 = vpop.permute.xlu0 %300 }
  0x96   : > { %v307_v19 = vmul.f32 %v306_v13, %v301_v17  ;;  %v424_v13 = vrot.slane %v277_v63, %v674_v9 }
  0x98   : > { %v308_v21 = vadd.f32 %v307_v19, %v298_v18 }
  0x9a   : > { %v318_v22 = vadd.f32 %v317_v20, %v308_v21  ;;  %v278_v21 = vld [vmem:[%s734_s5] sm:$0x1f] }
  0x9c   : > { %v319_v23 = vmax.f32 %v318_v22, 0.0  ;;  %v436_v22 = vrot.slane %v278_v21, %v667_v6  ;;  %v472_v6 = vrot.slane %v278_v21, %v363_v37 }
  0x9e   : > { %348 = vperm.xlu0 %575, %v319_v23   ;;  %322 = vperm.xlu1 %573, %v319_v23  }
  0xa2   : > { %578 = vset.pattern.permute.xlu0 %v599_v24  ;;  %574 = vset.pattern.permute.xlu1 %v598_v3 }
  0xa3   : > { %378 = vperm.xlu0 %578, %v319_v23   ;;  %338 = vperm.xlu1 %574, %v319_v23  }
  0xa7   : > { %581 = vset.pattern.permute.xlu0 %v600_v25  ;;  %576 = vset.pattern.permute.xlu1 %v601_v26  ;;  %v452_v25 = vrot.slane %v278_v21, %v674_v9 }
  0xa8   : > { %408 = vperm.xlu0 %581, %v319_v23   ;;  %358 = vperm.xlu1 %576, %v319_v23  }
  0xac   : > { %577 = vset.pattern.permute.xlu1 %v602_v27  ;;  %584 = vset.pattern.permute.xlu0 %v598_v3  ;;  %v404_v3 = vrot.slane %v276_v31, %v403_v60 }
  0xad   : > { %368 = vperm.xlu1 %577, %v319_v23  }
  0xb1   : > { %579 = vset.pattern.permute.xlu1 %v603_v28 }
  0xb2   : > { %388 = vperm.xlu1 %579, %v319_v23  }
  0xb6   : > { %580 = vset.pattern.permute.xlu1 %v604_v29 }
  0xb7   : > { %398 = vperm.xlu1 %580, %v319_v23  }
  0xbb   : > { %582 = vset.pattern.permute.xlu1 %v605_v30 }
  0xbc   : > { %418 = vperm.xlu1 %582, %v319_v23   ;;  %v549_v23 = vld [vmem:[%s735_s6] ss:$0 sm:$0xff] }
  0xc0   : > { %583 = vset.pattern.permute.xlu1 %v596_v0 }
 0x11d   : > { %v323_v33 = vpop.permute.xlu1 %322  ;;  %v349_v42 = vpop.permute.xlu0 %348 }
 0x11e   : > { %v329_v34 = vmul.f32 %v328_v32, %v323_v33  ;;  %v355_v46 = vmul.f32 %v354_v39, %v349_v42  ;;  %v482_v33 = vrot.slane %v278_v21, %v373_v45 }
 0x120   : > { %v336_v40 = vadd.f32 %v548_v36, %v329_v34 }
 0x122   : > { %v339_v38 = vpop.permute.xlu1 %338  ;;  %v379_v57 = vpop.permute.xlu0 %378 }
 0x123   : > { %v345_v41 = vmul.f32 %v344_v35, %v339_v38  ;;  %v385_v61 = vmul.f32 %v384_v54, %v379_v57 }
 0x125   : > { %v346_v43 = vadd.f32 %v345_v41, %v336_v40 }
 0x127   : > { %v359_v47 = vpop.permute.xlu1 %358  ;;  %v356_v49 = vadd.f32 %v355_v46, %v346_v43  ;;  %v409_v7 = vpop.permute.xlu0 %408 }
 0x128   : > { %v365_v50 = vmul.f32 %v364_v44, %v359_v47  ;;  %v415_v14 = vmul.f32 %v414_v4, %v409_v7 }
 0x12a   : > { %v366_v55 = vadd.f32 %v365_v50, %v356_v49 }
 0x12c   : > { %v369_v53 = vpop.permute.xlu1 %368 }
 0x12d   : > { %v375_v56 = vmul.f32 %v374_v51, %v369_v53 }
 0x12f   : > { %v376_v58 = vadd.f32 %v375_v56, %v366_v55 }
 0x131   : > { %v389_v62 = vpop.permute.xlu1 %388  ;;  %v386_v0 = vadd.f32 %v385_v61, %v376_v58 }
 0x132   : > { %v395_v2 = vmul.f32 %v394_v59, %v389_v62 }
 0x134   : > { %v396_v11 = vadd.f32 %v395_v2, %v386_v0 }
 0x136   : > { %v399_v8 = vpop.permute.xlu1 %398 }
 0x137   : > { %v405_v12 = vmul.f32 %v404_v3, %v399_v8 }
 0x139   : > { %v406_v15 = vadd.f32 %v405_v12, %v396_v11 }
 0x13b   : > { %v416_v16 = vadd.f32 %v415_v14, %v406_v15  ;;  %v419_v17 = vpop.permute.xlu1 %418 }
 0x13c   : > { %v425_v18 = vmul.f32 %v424_v13, %v419_v17 }
 0x13e   : > { %v426_v19 = vadd.f32 %v425_v18, %v416_v16 }
 0x140   : > { %v427_v20 = vmax.f32 %v426_v19, 0.0 }
 0x142   : > { %446 = vperm.xlu0 %584, %v427_v20   ;;  %430 = vperm.xlu1 %583, %v427_v20  }
 0x146   : > { %587 = vset.pattern.permute.xlu0 %v602_v27  ;;  %585 = vset.pattern.permute.xlu1 %v597_v1 }
 0x147   : > { %476 = vperm.xlu0 %587, %v427_v20   ;;  %456 = vperm.xlu1 %585, %v427_v20  }
 0x14b   : > { %586 = vset.pattern.permute.xlu1 %v601_v26  ;;  %v462_v26 = vrot.slane %v278_v21, %v677_v10 }
 0x14c   : > { %466 = vperm.xlu1 %586, %v427_v20  }
 0x1c1   : > { %v431_v24 = vpop.permute.xlu1 %430  ;;  %v447_v1 = vpop.permute.xlu0 %446 }
 0x1c2   : > { %v437_v27 = vmul.f32 %v436_v22, %v431_v24  ;;  %v453_v29 = vmul.f32 %v452_v25, %v447_v1 }
 0x1c4   : > { %v444_v28 = vadd.f32 %v549_v23, %v437_v27 }
 0x1c6   : > { %v457_v30 = vpop.permute.xlu1 %456  ;;  %v454_v31 = vadd.f32 %v453_v29, %v444_v28  ;;  %v477_v34 = vpop.permute.xlu0 %476 }
 0x1c7   : > { %v463_v32 = vmul.f32 %v462_v26, %v457_v30  ;;  %v483_v39 = vmul.f32 %v482_v33, %v477_v34 }
 0x1c9   : > { %v464_v36 = vadd.f32 %v463_v32, %v454_v31 }
 0x1cb   : > { %v467_v35 = vpop.permute.xlu1 %466 }
 0x1cc   : > { %v473_v38 = vmul.f32 %v472_v6, %v467_v35 }
 0x1ce   : > { %v474_v9 = vadd.f32 %v473_v38, %v464_v36 }
 0x1d0   : > { %v484_v10 = vadd.f32 %v483_v39, %v474_v9 }
 0x1d2   : > { %486 = vst.msk [vmem:[%s273_s23] sm:$0xff] %vm485_vm0, %v484_v10 }
 0x1d3 PF: > { %s17_s24 = sadd.s32 1, %s594_s24  }
 0x1d4   : > { %p14_p4 = scmp.ge.s32.totalorder %s17_s24, 5  }
 0x1d6   :  { %16 = sbr.rel (!%p14_p4) target bundleno = 1 (0x1), region = 78 }

</bundles_post_ra>
